<compile_context>
chip_gen: v6e
topology: v6e:2x2x1
jax: 0.10.0
libtpu: 0.0.40
codegen_flags: <defaults>
</compile_context>

<pallas_src>
import functools

import jax
import jax.numpy as jnp
from jax.experimental import pallas as pl
from jax.experimental.pallas import tpu as pltpu


def _round_up(n, m):
    return ((n + m - 1) // m) * m


def mlp_scale_kernel(x_ref, w1_ref, b1_ref, w2_ref, b2_ref, h_ref, dist_ref):
    # Layer 1 (folded): (bb/pack, pack*D) @ (pack*D, pack*H) block-diag == per-row Linear.
    h = jnp.dot(x_ref[...], w1_ref[...], preferred_element_type=jnp.float32)
    h = jnp.maximum(h + b1_ref[...], 0.0)
    h_ref[...] = h.astype(h_ref.dtype)            # lane-dense store (pack*H == 128)

    # Head (folded): Linear(hidden -> 2) per original row via block-diagonal W2.
    logits = jnp.dot(h, w2_ref[...], preferred_element_type=jnp.float32) + b2_ref[...]

    # Columns alternate [loc, scale_raw, loc, scale_raw, ...].  Numerically-stable
    # softplus over the full tile, then per-column select (no width-1 column ops).
    sp = jnp.maximum(logits, 0.0) + jnp.log1p(jnp.exp(-jnp.abs(logits)))
    col = jax.lax.broadcasted_iota(jnp.int32, logits.shape, 1)
    dist_ref[...] = jnp.where((col & 1) == 0, logits, sp + 0.001).astype(dist_ref.dtype)


@functools.partial(jax.jit, static_argnames=("block_b",))
def mlp_scale_forward(x, w1, b1, w2, b2, *, block_b=8192):
    B, D = x.shape
    H = w1.shape[1]

    # Fold factor: pack rows together so hidden/output lane width reaches 128
    # (lane-dense stores).  pack = 2 for the default hidden_dimension = 64.
    pack = 128 // H if (H < 128 and 128 % H == 0) else 1
    align = 8 * pack                        # folded sublane block must be a multiple of 8

    # Block-size policy (rows of the ORIGINAL batch per grid step):
    #   huge batch : cap at block_b, keep >= 4 steps, size to minimize padding;
    #   mid batch  : >= 4 steps (v7x has 2 TCs; also enables prefetch/compute overlap);
    #   small batch: single step, round up only to `align` rows (minimal padding).
    if B > block_b:
        n_steps = max(4, -(-B // block_b))
        bb = _round_up(-(-B // n_steps), align)
    elif B >= 4096:
        bb = _round_up(-(-B // 4), align)
    else:
        bb = _round_up(B, align)

    Bp = _round_up(B, bb)
    if Bp != B:
        x = jnp.pad(x, ((0, Bp - B), (0, 0)))

    # Fold `pack` consecutive rows into one (free, row-major) and block-diagonalize the
    # weights so the folded matmuls compute exactly the original per-row Linear layers.
    Dp, Hp, Np = pack * D, pack * H, pack * 2
    x_f = x.reshape(Bp // pack, Dp)
    eye = jnp.eye(pack, dtype=w1.dtype)
    w1_f = jnp.kron(eye, w1)                       # (Dp, Hp) block-diagonal
    b1_f = jnp.tile(b1.reshape(1, H), (1, pack))   # (1, Hp)
    w2_f = jnp.kron(eye, w2)                       # (Hp, Np) block-diagonal
    b2_f = jnp.tile(b2.reshape(1, 2), (1, pack))   # (1, Np)

    bb_f = bb // pack
    grid = (Bp // bb,)

    # Advisory cost + explicit VMEM budget for the larger blocks.
    flops = 2 * (Bp // pack) * (Dp * Hp + Hp * Np)
    bytes_accessed = 4 * (Bp * (D + H + 2) + Dp * Hp + Hp + Hp * Np + Np)
    cost = pl.CostEstimate(flops=flops, transcendentals=4 * Bp,
                           bytes_accessed=bytes_accessed)
    block_bytes = 4 * bb * (D + H + 2)
    weight_bytes = 4 * (Dp * Hp + Hp + Hp * Np + Np)
    vmem_limit = int(min(2 * (block_bytes + weight_bytes) + (4 << 20), 48 << 20))

    h_f, dist_f = pl.pallas_call(
        mlp_scale_kernel,
        out_shape=(
            jax.ShapeDtypeStruct((Bp // pack, Hp), jnp.float32),   # folded h (lane dense)
            jax.ShapeDtypeStruct((Bp // pack, Np), jnp.float32),   # folded [loc, scale]
        ),
        grid_spec=pltpu.PrefetchScalarGridSpec(
            num_scalar_prefetch=0,
            grid=grid,
            in_specs=[
                pl.BlockSpec((bb_f, Dp), lambda i: (i, 0)),   # folded x tile
                pl.BlockSpec((Dp, Hp), lambda i: (0, 0)),     # W1 block-diag (resident)
                pl.BlockSpec((1, Hp), lambda i: (0, 0)),      # b1
                pl.BlockSpec((Hp, Np), lambda i: (0, 0)),     # W2 block-diag (resident)
                pl.BlockSpec((1, Np), lambda i: (0, 0)),      # b2
            ],
            out_specs=[
                pl.BlockSpec((bb_f, Hp), lambda i: (i, 0)),
                pl.BlockSpec((bb_f, Np), lambda i: (i, 0)),
            ],
        ),
        compiler_params=pltpu.CompilerParams(
            dimension_semantics=("parallel",),
            vmem_limit_bytes=vmem_limit),
        cost_estimate=cost,
    )(x_f, w1_f, b1_f, w2_f, b2_f)

    # Un-fold (free, row-major), strip padding, split loc/scale.
    h = h_f.reshape(Bp, H)[:B]
    dist = dist_f.reshape(Bp, 2)[:B]
    return h, dist[:, 0], dist[:, 1]


def init_params(key, input_dimension, hidden_dimension=64):
    """torch.nn.Linear default init: U(-1/sqrt(fan_in), 1/sqrt(fan_in))."""
    k1, k2, k3, k4 = jax.random.split(key, 4)
    bound1 = 1.0 / jnp.sqrt(input_dimension)
    w1 = jax.random.uniform(k1, (input_dimension, hidden_dimension),
                            jnp.float32, -bound1, bound1)
    b1 = jax.random.uniform(k2, (1, hidden_dimension), jnp.float32, -bound1, bound1)
    bound2 = 1.0 / jnp.sqrt(hidden_dimension)
    w2 = jax.random.uniform(k3, (hidden_dimension, 2), jnp.float32, -bound2, bound2)
    b2 = jax.random.uniform(k4, (1, 2), jnp.float32, -bound2, bound2)
    return w1, b1, w2, b2


if __name__ == "__main__":
    key = jax.random.PRNGKey(0)
    k_x, k_p, k_x2 = jax.random.split(key, 3)

    # Small shapes; B deliberately NOT a multiple of the alignment to exercise padding.
    B, D, H = 20, 32, 64              # batch, input_dimension, hidden_dimension
    x = jax.random.normal(k_x, (B, D), dtype=jnp.float32)
    w1, b1, w2, b2 = init_params(k_p, D, H)

    h, loc, scale = mlp_scale_forward(x, w1, b1, w2, b2)
    jax.block_until_ready((h, loc, scale))

    # Mirror of the PyTorch forward's debug print (on the MLP output h).
    print("MLP output:", float(h.mean()), float(h.min()), float(h.max()),
          "any nan?", bool(jnp.isnan(h).any()))

    def ref(xv):
        h_r = jnp.maximum(xv @ w1 + b1, 0.0)
        logits_r = h_r @ w2 + b2
        return h_r, logits_r[:, 0], jax.nn.softplus(logits_r[:, 1]) + 0.001

    h_r, loc_r, scale_r = ref(x)
    assert h.shape == (B, H) and loc.shape == (B,) and scale.shape == (B,)
    assert jnp.allclose(h, h_r, atol=1e-5)
    assert jnp.allclose(loc, loc_r, atol=1e-5)
    assert jnp.allclose(scale, scale_r, atol=1e-5)
    assert bool(jnp.all(scale > 0.0))

    # Exercise the multi-step (grid > 1) + padded path with a small block size.
    B2 = 300
    x2 = jax.random.normal(k_x2, (B2, D), dtype=jnp.float32)
    h2, loc2, scale2 = mlp_scale_forward(x2, w1, b1, w2, b2, block_b=64)
    jax.block_until_ready((h2, loc2, scale2))
    h2_r, loc2_r, scale2_r = ref(x2)
    assert jnp.allclose(h2, h2_r, atol=1e-5)
    assert jnp.allclose(loc2, loc2_r, atol=1e-5)
    assert jnp.allclose(scale2, scale2_r, atol=1e-5)

    # TODO(synk): torch.distributions.Normal object itself is not reproduced;
    # the kernel returns its (loc, scale) parameters instead.
    print("KERNEL_OK")
</pallas_src>

<mosaic_0001>
module attributes {stable_mosaic.version = 11 : i64} {
  func.func @mlp_scale_kernel(%arg0: i32, %arg1: memref<16x64xf32, #tpu.memory_space<vmem>>, %arg2: memref<64x128xf32, #tpu.memory_space<vmem>>, %arg3: memref<1x128xf32, #tpu.memory_space<vmem>>, %arg4: memref<128x4xf32, #tpu.memory_space<vmem>>, %arg5: memref<1x4xf32, #tpu.memory_space<vmem>>, %arg6: memref<16x128xf32, #tpu.memory_space<vmem>>, %arg7: memref<16x4xf32, #tpu.memory_space<vmem>>) attributes {dimension_semantics = [#tpu.dimension_semantics<parallel>], iteration_bounds = array<i64: 1>, scalar_prefetch = 0 : i64, scratch_operands = 0 : i64, tpu.core_type = #tpu.core_type<tc>, window_params = [{transform_indices = @transform_0, window_bounds = array<i64: 16, 64>}, {pipeline_mode = #tpu.pipeline_mode<synchronous>, transform_indices = @transform_1, window_bounds = array<i64: 64, 128>}, {pipeline_mode = #tpu.pipeline_mode<synchronous>, transform_indices = @transform_2, window_bounds = array<i64: 1, 128>}, {pipeline_mode = #tpu.pipeline_mode<synchronous>, transform_indices = @transform_3, window_bounds = array<i64: 128, 4>}, {pipeline_mode = #tpu.pipeline_mode<synchronous>, transform_indices = @transform_4, window_bounds = array<i64: 1, 4>}, {transform_indices = @transform_5, window_bounds = array<i64: 16, 128>}, {transform_indices = @transform_6, window_bounds = array<i64: 16, 4>}]} {
    %c0 = arith.constant 0 : index
    %c0_0 = arith.constant 0 : index
    %0 = vector.load %arg1[%c0, %c0_0] : memref<16x64xf32, #tpu.memory_space<vmem>>, vector<16x64xf32>
    %c0_1 = arith.constant 0 : index
    %c0_2 = arith.constant 0 : index
    %1 = vector.load %arg2[%c0_1, %c0_2] : memref<64x128xf32, #tpu.memory_space<vmem>>, vector<64x128xf32>
    %cst = arith.constant dense<0.000000e+00> : vector<16x128xf32>
    %2 = tpu.matmul %0, %1, %cst {dimension_numbers = #tpu.dot_dimension_numbers<[1], [0], [0], [1], [0, 0, 1, 1], [], []>} : vector<16x64xf32>, vector<64x128xf32>, vector<16x128xf32> -> vector<16x128xf32>
    %c0_3 = arith.constant 0 : index
    %c0_4 = arith.constant 0 : index
    %3 = vector.load %arg3[%c0_3, %c0_4] : memref<1x128xf32, #tpu.memory_space<vmem>>, vector<1x128xf32>
    %4 = vector.broadcast %3 : vector<1x128xf32> to vector<16x128xf32>
    %5 = arith.addf %2, %4 : vector<16x128xf32>
    %cst_5 = arith.constant 0.000000e+00 : f32
    %6 = vector.broadcast %cst_5 : f32 to vector<16x128xf32>
    %7 = arith.maximumf %5, %6 : vector<16x128xf32>
    %c0_6 = arith.constant 0 : index
    %c0_7 = arith.constant 0 : index
    %8 = vector.load %arg6[%c0_6, %c0_7] : memref<16x128xf32, #tpu.memory_space<vmem>>, vector<16x128xf32>
    tpu.vector_store %arg6[%c0_6, %c0_7], %7 {strides = array<i32>} : memref<16x128xf32, #tpu.memory_space<vmem>>, vector<16x128xf32>,
    %c0_8 = arith.constant 0 : index
    %c0_9 = arith.constant 0 : index
    %9 = vector.load %arg4[%c0_8, %c0_9] : memref<128x4xf32, #tpu.memory_space<vmem>>, vector<128x4xf32>
    %cst_10 = arith.constant dense<0.000000e+00> : vector<16x4xf32>
    %10 = tpu.matmul %7, %9, %cst_10 {dimension_numbers = #tpu.dot_dimension_numbers<[1], [0], [0], [1], [0, 0, 1, 1], [], []>} : vector<16x128xf32>, vector<128x4xf32>, vector<16x4xf32> -> vector<16x4xf32>
    %c0_11 = arith.constant 0 : index
    %c0_12 = arith.constant 0 : index
    %11 = vector.load %arg5[%c0_11, %c0_12] : memref<1x4xf32, #tpu.memory_space<vmem>>, vector<1x4xf32>
    %12 = vector.broadcast %11 : vector<1x4xf32> to vector<16x4xf32>
    %13 = arith.addf %10, %12 : vector<16x4xf32>
    %cst_13 = arith.constant 0.000000e+00 : f32
    %14 = vector.broadcast %cst_13 : f32 to vector<16x4xf32>
    %15 = arith.maximumf %13, %14 : vector<16x4xf32>
    %16 = math.absf %13 : vector<16x4xf32>
    %cst_14 = arith.constant 0.000000e+00 : f32
    %17 = vector.broadcast %cst_14 : f32 to vector<16x4xf32>
    %18 = arith.subf %17, %16 : vector<16x4xf32>
    %19 = math.exp %18 : vector<16x4xf32>
    %20 = math.log1p %19 : vector<16x4xf32>
    %21 = arith.addf %15, %20 : vector<16x4xf32>
    %22 = tpu.iota {dimensions = array<i32: 1>} : vector<16x4xi32>
    %c1_i32 = arith.constant 1 : i32
    %23 = vector.broadcast %c1_i32 : i32 to vector<16x4xi32>
    %24 = arith.andi %22, %23 : vector<16x4xi32>
    %c0_i32 = arith.constant 0 : i32
    %25 = vector.broadcast %c0_i32 : i32 to vector<16x4xi32>
    %26 = arith.cmpi eq, %24, %25 : vector<16x4xi32>
    %cst_15 = arith.constant 1.000000e-03 : f32
    %27 = vector.broadcast %cst_15 : f32 to vector<16x4xf32>
    %28 = arith.addf %21, %27 : vector<16x4xf32>
    %29 = arith.select %26, %13, %28 : vector<16x4xi1>, vector<16x4xf32>
    %c0_16 = arith.constant 0 : index
    %c0_17 = arith.constant 0 : index
    %30 = vector.load %arg7[%c0_16, %c0_17] : memref<16x4xf32, #tpu.memory_space<vmem>>, vector<16x4xf32>
    tpu.vector_store %arg7[%c0_16, %c0_17], %29 {strides = array<i32>} : memref<16x4xf32, #tpu.memory_space<vmem>>, vector<16x4xf32>,
    return
  }
  func.func @transform_0(%arg0: i32) -> (i32, i32) {
    %c0_i32 = arith.constant 0 : i32
    %c0_i32_0 = arith.constant 0 : i32
    return %arg0, %c0_i32 : i32, i32
  }
  func.func @transform_1(%arg0: i32) -> (i32, i32) {
    %c0_i32 = arith.constant 0 : i32
    %c0_i32_0 = arith.constant 0 : i32
    %c0_i32_1 = arith.constant 0 : i32
    return %c0_i32, %c0_i32_0 : i32, i32
  }
  func.func @transform_2(%arg0: i32) -> (i32, i32) {
    %c0_i32 = arith.constant 0 : i32
    %c0_i32_0 = arith.constant 0 : i32
    %c0_i32_1 = arith.constant 0 : i32
    return %c0_i32, %c0_i32_0 : i32, i32
  }
  func.func @transform_3(%arg0: i32) -> (i32, i32) {
    %c0_i32 = arith.constant 0 : i32
    %c0_i32_0 = arith.constant 0 : i32
    %c0_i32_1 = arith.constant 0 : i32
    return %c0_i32, %c0_i32_0 : i32, i32
  }
  func.func @transform_4(%arg0: i32) -> (i32, i32) {
    %c0_i32 = arith.constant 0 : i32
    %c0_i32_0 = arith.constant 0 : i32
    %c0_i32_1 = arith.constant 0 : i32
    return %c0_i32, %c0_i32_0 : i32, i32
  }
  func.func @transform_5(%arg0: i32) -> (i32, i32) {
    %c0_i32 = arith.constant 0 : i32
    %c0_i32_0 = arith.constant 0 : i32
    return %arg0, %c0_i32 : i32, i32
  }
  func.func @transform_6(%arg0: i32) -> (i32, i32) {
    %c0_i32 = arith.constant 0 : i32
    %c0_i32_0 = arith.constant 0 : i32
    return %arg0, %c0_i32 : i32, i32
  }
}

</mosaic_0001>

<bundles_post_ra>
// kernel: mlp_scale_forward.1
= control target key start
LH: loop header
LB: loop body
LE: loop exit
PB: predicated region body
PF: predicated region fallthrough
CT: control target
= control target key end

     0   :  { %vm39_vm0 = vcmask 523264   ;;  %v253_v49 = vlaneseq  ;;  %vm261_vm4 = vcmask 31744   ;;  %s499_s1 = inlined_call_operand.vmem [shape: f32[64,128], index: 1, kind: input, shape index: {}]   ;;  %s500_s0 = inlined_call_operand.vmem [shape: f32[16,64], index: 0, kind: input, shape index: {}]   ;;  %s501_s3 = inlined_call_operand.vmem [shape: f32[128,4], index: 3, kind: input, shape index: {}]   ;;  %s502_s2 = inlined_call_operand.vmem [shape: f32[1,128], index: 2, kind: input, shape index: {}]   ;;  %s503_s5 = inlined_call_operand.vmem [shape: f32[16,128], index: 5, kind: output, shape index: {0}]   ;;  %s504_s4 = inlined_call_operand.vmem [shape: f32[1,4], index: 4, kind: input, shape index: {}]   ;;  %s505_s6 = inlined_call_operand.vmem [shape: f32[16,4], index: 6, kind: output, shape index: {1}]  }
   0x1   :  { %v31_v0 = vld [vmem:[%s499_s1 + $0x38] sm:$0xff]  ;;  %v30_v1 = vld [vmem:[%s499_s1 + $0x30] sm:$0xff]  ;;  %v29_v2 = vld [vmem:[%s499_s1 + $0x28] sm:$0xff] }
   0x2   :  { %304 = vmatprep.subr.mxu0 %v31_v0  ;;  %v22_v3 = vld [vmem:[%s500_s0] sm:$0xff]  ;;  %v140_v4 = vld [vmem:[%s501_s3 + $0x78] sm:$0xff]  ;;  %v139_v5 = vld [vmem:[%s501_s3 + $0x70] sm:$0xff]  ;;  %v254_v52 = vand.u32 127, %v253_v49 }
   0x3   :  { %305 = vmatpush3.msra.mxu0 %v31_v0  ;;  %320 = vmatprep.mubr.msk.f32.mxu0 %vm39_vm0, %v22_v3  ;;  %v28_v6 = vld [vmem:[%s499_s1 + $0x20] sm:$0xff]  ;;  %v138_v7 = vld [vmem:[%s501_s3 + $0x68] sm:$0xff]  ;;  %v27_v8 = vld [vmem:[%s499_s1 + $0x18] sm:$0xff] }
   0x4   :  { %306 = vmatprep.subr.mxu0 %v30_v1  ;;  %323 = vmatprep.subr.mxu1 %v140_v4  ;;  %v137_v9 = vld [vmem:[%s501_s3 + $0x60] sm:$0xff]  ;;  %v26_v10 = vld [vmem:[%s499_s1 + $0x10] sm:$0xff]  ;;  %v136_v11 = vld [vmem:[%s501_s3 + $0x58] sm:$0xff]  ;;  %v255_v59 = vand.u32 1, %v254_v52 }
   0x5   :  { %307 = vmatpush3.msra.mxu0 %v30_v1  ;;  %324 = vmatpush3.msra.mxu1 %v140_v4  ;;  %v25_v12 = vld [vmem:[%s499_s1 + $0x8] sm:$0xff]  ;;  %v135_v13 = vld [vmem:[%s501_s3 + $0x50] sm:$0xff]  ;;  %v24_v14 = vld [vmem:[%s499_s1] sm:$0xff] }
   0x6   :  { %308 = vmatprep.subr.mxu0 %v29_v2  ;;  %325 = vmatprep.subr.mxu1 %v139_v5  ;;  %v134_v15 = vld [vmem:[%s501_s3 + $0x48] sm:$0xff]  ;;  %v133_v17 = vld [vmem:[%s501_s3 + $0x40] sm:$0xff]  ;;  %v132_v18 = vld [vmem:[%s501_s3 + $0x38] sm:$0xff]  ;;  %vm256_vm3 = vcmp.eq.s32.totalorder %v255_v59, 0 }
   0x7   :  { %309 = vmatpush3.msra.mxu0 %v29_v2  ;;  %326 = vmatpush3.msra.mxu1 %v139_v5  ;;  %v23_v16 = vld [vmem:[%s500_s0 + $0x8] sm:$0xff]  ;;  %v131_v19 = vld [vmem:[%s501_s3 + $0x30] sm:$0xff]  ;;  %v129_v21 = vld [vmem:[%s501_s3 + $0x20] sm:$0xff] }
   0x8   :  { %310 = vmatprep.subr.mxu0 %v28_v6  ;;  %327 = vmatprep.subr.mxu1 %v138_v7  ;;  %v130_v20 = vld [vmem:[%s501_s3 + $0x28] sm:$0xff]  ;;  %v128_v22 = vld [vmem:[%s501_s3 + $0x18] sm:$0xff]  ;;  %v127_v23 = vld [vmem:[%s501_s3 + $0x10] sm:$0xff] }
   0x9   :  { %311 = vmatpush3.msra.mxu0 %v28_v6  ;;  %328 = vmatpush3.msra.mxu1 %v138_v7  ;;  %v126_v24 = vld [vmem:[%s501_s3 + $0x8] sm:$0xff]  ;;  %v125_v25 = vld [vmem:[%s501_s3] sm:$0xff] }
   0xa   :  { %312 = vmatprep.subr.mxu0 %v27_v8  ;;  %329 = vmatprep.subr.mxu1 %v137_v9  ;;  %v272_v26 = vld [vmem:[%s502_s2] ss:$0 sm:$0xff] }
   0xb   :  { %313 = vmatpush3.msra.mxu0 %v27_v8  ;;  %330 = vmatpush3.msra.mxu1 %v137_v9  ;;  %v275_v33 = vld [vmem:[%s504_s4] ss:$0 sm:$0xff] }
   0xc   :  { %314 = vmatprep.subr.mxu0 %v26_v10  ;;  %331 = vmatprep.subr.mxu1 %v136_v11 }
   0xd   :  { %315 = vmatpush3.msra.mxu0 %v26_v10  ;;  %332 = vmatpush3.msra.mxu1 %v136_v11 }
   0xe   :  { %316 = vmatprep.subr.mxu0 %v25_v12  ;;  %333 = vmatprep.subr.mxu1 %v135_v13 }
   0xf   :  { %317 = vmatpush3.msra.mxu0 %v25_v12  ;;  %334 = vmatpush3.msra.mxu1 %v135_v13 }
  0x10   :  { %318 = vmatprep.subr.mxu0 %v24_v14  ;;  %335 = vmatprep.subr.mxu1 %v134_v15 }
  0x11   :  { %319 = vmatpush3.msra.mxu0 %v24_v14  ;;  %336 = vmatpush3.msra.mxu1 %v134_v15 }
  0x12   :  { %321 = vmatmul.mubr.msk.f32.vlgmr.msra.gmra.mxu0 %vm39_vm0, %v23_v16  ;;  %337 = vmatprep.subr.mxu1 %v133_v17 }
  0x13   :  { %338 = vmatpush3.msra.mxu1 %v133_v17 }
  0x14   :  { %339 = vmatprep.subr.mxu1 %v132_v18 }
  0x15   :  { %340 = vmatpush3.msra.mxu1 %v132_v18 }
  0x16   :  { %341 = vmatprep.subr.mxu1 %v131_v19 }
  0x17   :  { %342 = vmatpush3.msra.mxu1 %v131_v19 }
  0x18   :  { %343 = vmatprep.subr.mxu1 %v130_v20 }
  0x19   :  { %344 = vmatpush3.msra.mxu1 %v130_v20 }
  0x1a   :  { %345 = vmatprep.subr.mxu1 %v129_v21 }
  0x1b   :  { %346 = vmatpush3.msra.mxu1 %v129_v21 }
  0x1c   :  { %347 = vmatprep.subr.mxu1 %v128_v22 }
  0x1d   :  { %348 = vmatpush3.msra.mxu1 %v128_v22 }
  0x1e   :  { %349 = vmatprep.subr.mxu1 %v127_v23 }
  0x1f   :  { %350 = vmatpush3.msra.mxu1 %v127_v23 }
  0x20   :  { %351 = vmatprep.subr.mxu1 %v126_v24 }
  0x21   :  { %352 = vmatpush3.msra.mxu1 %v126_v24 }
  0x22   :  { %353 = vmatprep.subr.mxu1 %v125_v25 }
  0x23   :  { %354 = vmatpush3.msra.mxu1 %v125_v25 }
  0xd2   :  { %v322_v27 = vpop.f32.mrf.mxu0 }
  0xd3   :  { %v118_v28 = vadd.f32 %v322_v27, %v272_v26 }
  0xd4   :  { %v112_v29 = vpop.f32.mrf.mxu0 }
  0xd5   :  { %v122_v30 = vmax.f32 %v118_v28, 0.0  ;;  %v113_v31 = vadd.f32 %v272_v26, %v112_v29 }
  0xd7   :  { %124 = vst [vmem:[%s503_s5 + $0x8] sm:$0xff] %v122_v30  ;;  %v121_v32 = vmax.f32 %v113_v31, 0.0 }
  0xd9   :  { %123 = vst [vmem:[%s503_s5] sm:$0xff] %v121_v32  ;;  %355 = vmatprep.mubr.f32.mxu1 %v121_v32 }
  0xda   :  { %356 = vmatmul.mubr.f32.vlgmr.msra.gmra.mxu1 %v122_v30 }
 0x19a   :  { %v357_v34 = vpop.f32.mrf.mxu1 }
 0x19b   :  { %v220_v35 = vadd.f32 %v357_v34, %v275_v33 }
 0x19c   :  { %v214_v36 = vpop.f32.mrf.mxu1 }
 0x19d   :  { %v226_v37 = vand.u32 2147483647, %v220_v35  ;;  %v215_v38 = vadd.f32 %v275_v33, %v214_v36  ;;  %v224_v61 = vmax.f32 %v220_v35, 0.0 }
 0x19f   :  { %v228_v39 = vsub.f32 0.0, %v226_v37  ;;  %v225_v40 = vand.u32 2147483647, %v215_v38  ;;  %v223_v2 = vmax.f32 %v215_v38, 0.0 }
 0x1a1   :  { %v231_v41 = vmul.f32 1.442695, %v228_v39  ;;  %v227_v42 = vsub.f32 0.0, %v225_v40 }
 0x1a3   :  { %358 = vpow2.f32 %v231_v41  ;;  %v229_v43 = vmul.f32 1.442695, %v227_v42 }
 0x1a5   :  { %360 = vpow2.f32 %v229_v43 }
 0x1b0   :  { %v359_v44 = vpop.eup %358 }
 0x1b1   :  { %v242_v45 = vadd.f32 1.0, %v359_v44  ;;  %v245_v48 = vmul.f32 -0.5, %v359_v44  ;;  %v248_v53 = vand.u32 2147483647, %v359_v44 }
 0x1b2   :  { %v361_v46 = vpop.eup %360 }
 0x1b3   :  { %362 = vlog2.f32 %v242_v45  ;;  %v233_v47 = vadd.f32 1.0, %v361_v46  ;;  %v236_v50 = vmul.f32 -0.5, %v361_v46  ;;  %v246_v51 = vadd.f32 1.0, %v245_v48 }
 0x1b4   :  { %v239_v56 = vand.u32 2147483647, %v361_v46  ;;  %vm249_vm1 = vcmp.lt.f32.partialorder %v248_v53, 0.0004427343 }
 0x1b5   :  { %364 = vlog2.f32 %v233_v47  ;;  %v237_v54 = vadd.f32 1.0, %v236_v50  ;;  %v247_v58 = vmul.f32 %v359_v44, %v246_v51 }
 0x1b6   :  { %vm240_vm2 = vcmp.lt.f32.partialorder %v239_v56, 0.0004427343 }
 0x1b7   :  { %v238_v0 = vmul.f32 %v361_v46, %v237_v54 }
 0x1c0   :  { %v363_v55 = vpop.eup %362 }
 0x1c1   :  { %v244_v57 = vmul.f32 0.6931472, %v363_v55 }
 0x1c2   :  { %v365_v60 = vpop.eup %364 }
 0x1c3   :  { %v250_v62 = vsel %vm249_vm1, %v247_v58, %v244_v57  ;;  %v235_v63 = vmul.f32 0.6931472, %v365_v60 }
 0x1c4   :  { %v252_v1 = vadd.f32 %v250_v62, %v224_v61 }
 0x1c5   :  { %v241_v3 = vsel %vm240_vm2, %v238_v0, %v235_v63 }
 0x1c6   :  { %v258_v4 = vadd.f32 0.001, %v252_v1  ;;  %v251_v5 = vadd.f32 %v241_v3, %v223_v2 }
 0x1c8   :  { %v260_v6 = vsel %vm256_vm3, %v220_v35, %v258_v4  ;;  %v257_v7 = vadd.f32 0.001, %v251_v5 }
 0x1c9   :  { %263 = vst.msk [vmem:[%s505_s6 + $0x8] sm:$0xff] %vm261_vm4, %v260_v6 }
 0x1ca   :  { %v259_v8 = vsel %vm256_vm3, %v215_v38, %v257_v7 }
 0x1cb   :  { %262 = vst.msk [vmem:[%s505_s6] sm:$0xff] %vm261_vm4, %v259_v8 }

</bundles_post_ra>
